<compile_context>
chip_gen: v7x
topology: tpu7x:2x2x1
jax: 0.10.0
libtpu: 0.0.40
codegen_flags: <defaults>
</compile_context>

<pallas_src>
from functools import partial

import jax
import jax.numpy as jnp
from jax.experimental import pallas as pl
from jax.experimental.pallas import tpu as pltpu


def _aggregator_kernel(x_ref, e_ref, w_in_ref, w_sum_ref, b_ref, out_ref, *,
                       inv_views, mxu_dtype):
    # x_ref: (tg, V, F_in)   e_ref: (tg, V, D)
    # w_in_ref: (F_in, D_pad)  w_sum_ref: (D, D_pad)  b_ref: (1, D_pad)  out_ref: (tg, D_pad)

    # Mean over the views axis BEFORE the linears (affine commutes with the mean).  f32 VPU.
    x_mean = jnp.sum(x_ref[...], axis=1) * inv_views          # (tg, F_in)
    e_mean = jnp.sum(e_ref[...], axis=1) * inv_views          # (tg, D)

    # Fused affine map: out = [x_mean, e_mean] @ [[W_in], [W_sum]] + b_total,
    # realised as two MXU dots sharing one f32 accumulator.
    acc = jnp.dot(x_mean.astype(mxu_dtype), w_in_ref[...],
                  preferred_element_type=jnp.float32)
    acc = acc + jnp.dot(e_mean.astype(mxu_dtype), w_sum_ref[...],
                        preferred_element_type=jnp.float32)

    # Bias add in f32, lane-dense (D_pad is a multiple of 128) unmasked store.
    out_ref[...] = (acc + b_ref[...]).astype(out_ref.dtype)


def _pick_row_tile(g):
    """Largest row tile (multiple of 8) that divides G; fall back to the full extent."""
    for tg in (1024, 512, 256, 128, 64, 32, 16, 8):
        if g >= tg and g % tg == 0:
            return tg
    return g


def features_aggregator(inpt, enc, w_in, b_in, w_res, b_res, *, nviews,
                        mxu_dtype=jnp.float32):
    """inpt: (N, F_in), enc: (N, D), w_in: (F_in, D), b_in: (1, D),
    w_res: (L, D, D), b_res: (L, 1, D).  Returns (N // nviews, D) float32."""
    n, f_in = inpt.shape
    d = w_in.shape[1]
    assert nviews >= 1 and n % nviews == 0, "rows must be view-contiguous groups"
    g = n // nviews
    d_pad = ((d + 127) // 128) * 128          # lane-dense output stores

    # Collapse the residual loop once (sum of linear maps) — weights are tiny.
    w_sum = jnp.sum(w_res, axis=0)                                   # (D, D)
    b_total = (b_in + jnp.sum(b_res, axis=0)).astype(jnp.float32)    # (1, D)

    pad = d_pad - d
    if pad:
        w_in_p = jnp.pad(w_in, ((0, 0), (0, pad)))
        w_sum_p = jnp.pad(w_sum, ((0, 0), (0, pad)))
        b_p = jnp.pad(b_total, ((0, 0), (0, pad)))
    else:
        w_in_p, w_sum_p, b_p = w_in, w_sum, b_total
    w_in_p = w_in_p.astype(mxu_dtype)
    w_sum_p = w_sum_p.astype(mxu_dtype)

    # Free, contiguous reshapes (views are contiguous per group) -> (G, V, F).
    x3 = inpt.reshape(g, nviews, f_in)
    e3 = enc.reshape(g, nviews, d)

    tg = _pick_row_tile(g)
    grid = (g // tg,)

    kernel = partial(_aggregator_kernel,
                     inv_views=float(1.0 / nviews), mxu_dtype=mxu_dtype)

    out_pad = pl.pallas_call(
        kernel,
        out_shape=jax.ShapeDtypeStruct((g, d_pad), jnp.float32),
        grid_spec=pltpu.PrefetchScalarGridSpec(
            num_scalar_prefetch=0,
            grid=grid,
            in_specs=[
                pl.BlockSpec((tg, nviews, f_in), lambda i: (i, 0, 0)),   # inpt tile
                pl.BlockSpec((tg, nviews, d), lambda i: (i, 0, 0)),      # enc tile
                pl.BlockSpec((f_in, d_pad), lambda i: (0, 0)),           # W_in (resident)
                pl.BlockSpec((d, d_pad), lambda i: (0, 0)),              # W_sum (resident)
                pl.BlockSpec((1, d_pad), lambda i: (0, 0)),              # b_total (resident)
            ],
            out_specs=pl.BlockSpec((tg, d_pad), lambda i: (i, 0)),
        ),
        compiler_params=pltpu.CompilerParams(
            dimension_semantics=("parallel",)),     # rows independent -> megacore sharding
    )(x3, e3, w_in_p, w_sum_p, b_p)

    return out_pad[:, :d] if pad else out_pad


if __name__ == "__main__":
    conf = dict(inpt=3, octaves_pe=4, octaves_pe_views=4, normals=True,
                out=32, hidden_dim=32, res_blocks=2, mean_layer=2, nviews=2)

    F_in = (conf['inpt'] * 2 * conf['octaves_pe'] + conf['inpt']
            + conf['inpt'] * 2 * conf['octaves_pe_views'] + conf['inpt'])
    if conf['normals']:
        F_in += 3                       # -> 57
    D = conf['hidden_dim']              # 32
    L = conf['res_blocks']              # forward loops over len(self.resnet) = res_blocks
    V = conf['nviews']                  # 2
    batch_groups = 4
    N = batch_groups * V                # 8

    key = jax.random.PRNGKey(0)
    k1, k2, k3, k4 = jax.random.split(key, 4)

    # Deterministic Kaiming-normal (fan_in, a=0) init: std = sqrt(2 / fan_in); biases = 0.
    # Weights stored already transposed: (in_features, out_features).
    w_in = jax.random.normal(k1, (F_in, D), jnp.float32) * jnp.sqrt(2.0 / F_in)
    b_in = jnp.zeros((1, D), jnp.float32)
    w_res = jax.random.normal(k2, (L, D, D), jnp.float32) * jnp.sqrt(2.0 / D)
    b_res = jnp.zeros((L, 1, D), jnp.float32)

    inpt = jax.random.normal(k3, (N, F_in), jnp.float32)
    enc = jax.random.normal(k4, (N, D), jnp.float32)

    # Pure-JAX reference of the original (unfused) forward pass.
    ref = inpt @ w_in + b_in
    for i in range(L):
        ref = ref + enc @ w_res[i] + b_res[i]
    ref = ref.reshape(N // V, V, D).mean(axis=1)

    # f32 path (exact math, tight tolerance).
    out = features_aggregator(inpt, enc, w_in, b_in, w_res, b_res, nviews=V)
    out = jax.block_until_ready(out)
    assert out.shape == (N // V, D)
    assert jnp.allclose(out, ref, atol=1e-4), "f32 kernel / reference mismatch"

    # bf16 MXU operands with f32 accumulation (v6e / v7x fast path), looser tolerance.
    out_bf16 = features_aggregator(inpt, enc, w_in, b_in, w_res, b_res,
                                   nviews=V, mxu_dtype=jnp.bfloat16)
    out_bf16 = jax.block_until_ready(out_bf16)
    assert jnp.allclose(out_bf16, ref, atol=1e-1, rtol=1e-1), "bf16 kernel mismatch"

    print("KERNEL_OK")
</pallas_src>

<mosaic_0001>
module attributes {stable_mosaic.version = 11 : i64} {
  func.func @_aggregator_kernel(%arg0: i32, %arg1: memref<4x2x57xf32, #tpu.memory_space<vmem>>, %arg2: memref<4x2x32xf32, #tpu.memory_space<vmem>>, %arg3: memref<57x128xf32, #tpu.memory_space<vmem>>, %arg4: memref<32x128xf32, #tpu.memory_space<vmem>>, %arg5: memref<1x128xf32, #tpu.memory_space<vmem>>, %arg6: memref<4x128xf32, #tpu.memory_space<vmem>>) attributes {dimension_semantics = [#tpu.dimension_semantics<parallel>], iteration_bounds = array<i64: 1>, scalar_prefetch = 0 : i64, scratch_operands = 0 : i64, tpu.core_type = #tpu.core_type<tc>, window_params = [{transform_indices = @transform_0, window_bounds = array<i64: 4, 2, 57>}, {transform_indices = @transform_1, window_bounds = array<i64: 4, 2, 32>}, {pipeline_mode = #tpu.pipeline_mode<synchronous>, transform_indices = @transform_2, window_bounds = array<i64: 57, 128>}, {pipeline_mode = #tpu.pipeline_mode<synchronous>, transform_indices = @transform_3, window_bounds = array<i64: 32, 128>}, {pipeline_mode = #tpu.pipeline_mode<synchronous>, transform_indices = @transform_4, window_bounds = array<i64: 1, 128>}, {transform_indices = @transform_5, window_bounds = array<i64: 4, 128>}]} {
    %c0 = arith.constant 0 : index
    %c0_0 = arith.constant 0 : index
    %c0_1 = arith.constant 0 : index
    %0 = vector.load %arg1[%c0, %c0_0, %c0_1] : memref<4x2x57xf32, #tpu.memory_space<vmem>>, vector<4x2x57xf32>
    %cst = arith.constant dense<0.000000e+00> : vector<4x57xf32>
    %1 = vector.multi_reduction <add>, %0, %cst [1] : vector<4x2x57xf32> to vector<4x57xf32>
    %cst_2 = arith.constant 5.000000e-01 : f32
    %2 = vector.broadcast %cst_2 : f32 to vector<4x57xf32>
    %3 = arith.mulf %1, %2 : vector<4x57xf32>
    %c0_3 = arith.constant 0 : index
    %c0_4 = arith.constant 0 : index
    %c0_5 = arith.constant 0 : index
    %4 = vector.load %arg2[%c0_3, %c0_4, %c0_5] : memref<4x2x32xf32, #tpu.memory_space<vmem>>, vector<4x2x32xf32>
    %cst_6 = arith.constant dense<0.000000e+00> : vector<4x32xf32>
    %5 = vector.multi_reduction <add>, %4, %cst_6 [1] : vector<4x2x32xf32> to vector<4x32xf32>
    %cst_7 = arith.constant 5.000000e-01 : f32
    %6 = vector.broadcast %cst_7 : f32 to vector<4x32xf32>
    %7 = arith.mulf %5, %6 : vector<4x32xf32>
    %c0_8 = arith.constant 0 : index
    %c0_9 = arith.constant 0 : index
    %8 = vector.load %arg3[%c0_8, %c0_9] : memref<57x128xf32, #tpu.memory_space<vmem>>, vector<57x128xf32>
    %cst_10 = arith.constant dense<0.000000e+00> : vector<4x128xf32>
    %9 = tpu.matmul %3, %8, %cst_10 {dimension_numbers = #tpu.dot_dimension_numbers<[1], [0], [0], [1], [0, 0, 1, 1], [], []>} : vector<4x57xf32>, vector<57x128xf32>, vector<4x128xf32> -> vector<4x128xf32>
    %c0_11 = arith.constant 0 : index
    %c0_12 = arith.constant 0 : index
    %10 = vector.load %arg4[%c0_11, %c0_12] : memref<32x128xf32, #tpu.memory_space<vmem>>, vector<32x128xf32>
    %cst_13 = arith.constant dense<0.000000e+00> : vector<4x128xf32>
    %11 = tpu.matmul %7, %10, %cst_13 {dimension_numbers = #tpu.dot_dimension_numbers<[1], [0], [0], [1], [0, 0, 1, 1], [], []>} : vector<4x32xf32>, vector<32x128xf32>, vector<4x128xf32> -> vector<4x128xf32>
    %12 = arith.addf %9, %11 : vector<4x128xf32>
    %c0_14 = arith.constant 0 : index
    %c0_15 = arith.constant 0 : index
    %13 = vector.load %arg5[%c0_14, %c0_15] : memref<1x128xf32, #tpu.memory_space<vmem>>, vector<1x128xf32>
    %14 = vector.broadcast %13 : vector<1x128xf32> to vector<4x128xf32>
    %15 = arith.addf %12, %14 : vector<4x128xf32>
    %c0_16 = arith.constant 0 : index
    %c0_17 = arith.constant 0 : index
    %16 = vector.load %arg6[%c0_16, %c0_17] : memref<4x128xf32, #tpu.memory_space<vmem>>, vector<4x128xf32>
    tpu.vector_store %arg6[%c0_16, %c0_17], %15 {strides = array<i32>} : memref<4x128xf32, #tpu.memory_space<vmem>>, vector<4x128xf32>,
    return
  }
  func.func @transform_0(%arg0: i32) -> (i32, i32, i32) {
    %c0_i32 = arith.constant 0 : i32
    %c0_i32_0 = arith.constant 0 : i32
    %c0_i32_1 = arith.constant 0 : i32
    return %arg0, %c0_i32, %c0_i32_0 : i32, i32, i32
  }
  func.func @transform_1(%arg0: i32) -> (i32, i32, i32) {
    %c0_i32 = arith.constant 0 : i32
    %c0_i32_0 = arith.constant 0 : i32
    %c0_i32_1 = arith.constant 0 : i32
    return %arg0, %c0_i32, %c0_i32_0 : i32, i32, i32
  }
  func.func @transform_2(%arg0: i32) -> (i32, i32) {
    %c0_i32 = arith.constant 0 : i32
    %c0_i32_0 = arith.constant 0 : i32
    %c0_i32_1 = arith.constant 0 : i32
    return %c0_i32, %c0_i32_0 : i32, i32
  }
  func.func @transform_3(%arg0: i32) -> (i32, i32) {
    %c0_i32 = arith.constant 0 : i32
    %c0_i32_0 = arith.constant 0 : i32
    %c0_i32_1 = arith.constant 0 : i32
    return %c0_i32, %c0_i32_0 : i32, i32
  }
  func.func @transform_4(%arg0: i32) -> (i32, i32) {
    %c0_i32 = arith.constant 0 : i32
    %c0_i32_0 = arith.constant 0 : i32
    %c0_i32_1 = arith.constant 0 : i32
    return %c0_i32, %c0_i32_0 : i32, i32
  }
  func.func @transform_5(%arg0: i32) -> (i32, i32) {
    %c0_i32 = arith.constant 0 : i32
    %c0_i32_0 = arith.constant 0 : i32
    return %arg0, %c0_i32 : i32, i32
  }
}

</mosaic_0001>

<bundles_post_ra>
// kernel: tpu_custom_call.1
= control target key start
LH: loop header
LB: loop body
LE: loop exit
PB: predicated region body
PF: predicated region fallthrough
CT: control target
= control target key end

     0   :  { %10 = vsyncpa [#allocation3], 0  ;;  %s693_s0 = inlined_call_operand.hbm [shape: f32[4,2,57], index: 0, kind: input, shape index: {}]   ;;  %s694_s1 = inlined_call_operand.hbm [shape: f32[4,2,32], index: 1, kind: input, shape index: {}]   ;;  %s695_s2 = inlined_call_operand.hbm [shape: f32[57,128], index: 2, kind: input, shape index: {}]   ;;  %s696_s3 = inlined_call_operand.hbm [shape: f32[32,128], index: 3, kind: input, shape index: {}]   ;;  %s697_s4 = inlined_call_operand.vmem [shape: f32[1,128], index: 4, kind: input, shape index: {}]   ;;  %s698_s5 = inlined_call_operand.hbm [shape: f32[4,128], index: 5, kind: output, shape index: {}]  }
   0x1   :  { %11 = vsyncpa [#allocation6], 0 }
   0x2   :  { %12 = vsyncpa [#allocation9], 0 }
   0x3   :  { %13 = vsyncpa [#allocation4], 0  ;;  %s553_s18 = smov [#allocation5]   ;;  %s554_s20 = smov [#allocation2]  }
   0x4   :  { %s31_s19 = sshll.u32 %s553_s18, 4  ;;  %s19_s21 = sshll.u32 %s554_s20, 4  ;;  %s32_s19 = int_to_ptr.vmem [resolvable:$true] %s31_s19  ;;  %s596_s21 = int_to_ptr.vmem [resolvable:$true] %s19_s21 }
   0x5   :  { %s435_s24 = scalar_lea.hbm %s694_s1, 128 }
   0x6   :  { %p436_p0 = scmp.ne.s32.totalorder %s694_s1, %s435_s24  ;;  %p439_p1 = scmp.lt.u32.totalorder %s435_s24, %s694_s1 }
   0x8   :  { %p441_p2 = pnand %p439_p1, %p436_p0 }
   0xa   :  { %444 = shalt.err (!%p441_p2)
}
   0xb   :  { %s445_s29 = scalar_lea.vmem %s32_s19, 128  ;;  %p450_p4 = scmp.lt.s32.totalorder %s32_s19, %s32_s19 }
   0xc   :  { %p446_p3 = scmp.ne.s32.totalorder %s32_s19, %s445_s29  ;;  %p451_p5 = scmp.lt.s32.totalorder %s445_s29, %s445_s29 }
   0xe   :  { %p452_p6 = por %p451_p5, %p450_p4 }
  0x10   :  { %p453_p7 = pnand %p452_p6, %p446_p3 }
  0x12   :  { %456 = shalt.err (!%p453_p7)
}
  0x13   :  { %s555_s30 = smov 32   ;;  %s556_s6 = smov 2  }
  0x14   :  { %37 = dma.hbm_to_vmem [thread:$0]  %s694_s1, 128, %s32_s19, [#allocation6], %s555_s30, %s555_s30, %s556_s6  }
  0x15   :  { %s457_s11 = scalar_lea.hbm %s693_s0, 128 }
  0x16   :  { %p458_p8 = scmp.ne.s32.totalorder %s693_s0, %s457_s11  ;;  %p461_p9 = scmp.lt.u32.totalorder %s457_s11, %s693_s0 }
  0x18   :  { %p463_p10 = pnand %p461_p9, %p458_p8 }
  0x1a   :  { %466 = shalt.err (!%p463_p10)
}
  0x1b   :  { %s467_s16 = scalar_lea.vmem %s596_s21, 128  ;;  %p472_p12 = scmp.lt.s32.totalorder %s596_s21, %s596_s21 }
  0x1c   :  { %p468_p11 = scmp.ne.s32.totalorder %s596_s21, %s467_s16  ;;  %p473_p13 = scmp.lt.s32.totalorder %s467_s16, %s467_s16 }
  0x1e   :  { %p474_p0 = por %p473_p13, %p472_p12 }
  0x20   :  { %p475_p1 = pnand %p474_p0, %p468_p11 }
  0x22   :  { %478 = shalt.err (!%p475_p1)
}
  0x23   :  { %25 = dma.hbm_to_vmem [thread:$0]  %s693_s0, 128, %s596_s21, [#allocation3], %s555_s30, %s555_s30, %s556_s6  }
  0x24   :  { %s557_s18 = smov [#allocation7]   ;;  %s479_s23 = scalar_lea.hbm %s695_s2, 1024 }
  0x25   :  { %s43_s19 = sshll.u32 %s557_s18, 4  ;;  %p480_p2 = scmp.ne.s32.totalorder %s695_s2, %s479_s23  ;;  %s44_s19 = int_to_ptr.vmem [resolvable:$true] %s43_s19 }
  0x26   :  { %p483_p3 = scmp.lt.u32.totalorder %s479_s23, %s695_s2 }
  0x28   :  { %p485_p4 = pnand %p483_p3, %p480_p2 }
  0x2a   :  { %488 = shalt.err (!%p485_p4)
}
  0x2b   :  { %s489_s28 = scalar_lea.vmem %s44_s19, 1024  ;;  %p494_p6 = scmp.lt.s32.totalorder %s44_s19, %s44_s19 }
  0x2c   :  { %p490_p5 = scmp.ne.s32.totalorder %s44_s19, %s489_s28  ;;  %p495_p7 = scmp.lt.s32.totalorder %s489_s28, %s489_s28 }
  0x2e   :  { %p496_p8 = por %p495_p7, %p494_p6 }
  0x30   :  { %p497_p9 = pnand %p496_p8, %p490_p5 }
  0x32   :  { %500 = shalt.err (!%p497_p9)
}
  0x33   :  { %s558_s0 = smov 128   ;;  %s559_s21 = smov 8  }
  0x34   :  { %49 = dma.hbm_to_vmem [thread:$0]  %s695_s2, 1024, %s44_s19, [#allocation6], %s558_s0, %s558_s0, %s559_s21  }
  0x35   :  { %s560_s6 = smov [#allocation8]   ;;  %s501_s10 = scalar_lea.hbm %s696_s3, 512 }
  0x36   :  { %s55_s7 = sshll.u32 %s560_s6, 4  ;;  %p502_p10 = scmp.ne.s32.totalorder %s696_s3, %s501_s10  ;;  %s56_s7 = int_to_ptr.vmem [resolvable:$true] %s55_s7 }
  0x37   :  { %p505_p11 = scmp.lt.u32.totalorder %s501_s10, %s696_s3 }
  0x39   :  { %p507_p12 = pnand %p505_p11, %p502_p10 }
  0x3b   :  { %510 = shalt.err (!%p507_p12)
}
  0x3c   :  { %s511_s15 = scalar_lea.vmem %s56_s7, 512  ;;  %p516_p0 = scmp.lt.s32.totalorder %s56_s7, %s56_s7 }
  0x3d   :  { %p512_p13 = scmp.ne.s32.totalorder %s56_s7, %s511_s15  ;;  %p517_p1 = scmp.lt.s32.totalorder %s511_s15, %s511_s15 }
  0x3f   :  { %p518_p2 = por %p517_p1, %p516_p0 }
  0x41   :  { %p519_p3 = pnand %p518_p2, %p512_p13 }
  0x43   :  { %522 = shalt.err (!%p519_p3)
}
  0x44   :  { %61 = dma.hbm_to_vmem [thread:$0]  %s696_s3, 512, %s56_s7, [#allocation9], %s558_s0, %s558_s0, %s559_s21  }
  0x45   :  { %545 = dma.done.wait [#allocation3], 128  }
  0x46   :  { %546 = vsyncadd [#allocation3], 4294967168 }
  0x47   :  { %547 = dma.done.wait [#allocation6], 1152  }
  0x48   :  { %548 = vsyncadd [#allocation6], 4294966144 }
  0x49   :  { %549 = dma.done.wait [#allocation9], 512  }
  0x4a   :  { %550 = vsyncadd [#allocation9], 4294966784  ;;  %v561_v0 = vmov 0.0|0.0   ;;  %vm562_vm0 = vmmov 0   ;;  %v563_v1 = vmov 0.0   ;;  %v150_v2 = vld [vmem:[#allocation7] sm:$0xff] }
  0x4b   :  { %409 = vmatprep.subr.bf16.mxu1 %v561_v0  ;;  %403 = vmatprep.subr.bf16.mxu0 %v561_v0  ;;  %v151_v3 = vld [vmem:[#allocation7 + $0x8] sm:$0xff]  ;;  %v152_v4 = vld [vmem:[#allocation7 + $0x10] sm:$0xff]  ;;  %v153_v6 = vld [vmem:[#allocation7 + $0x18] sm:$0xff]  ;;  %vm117_vm1 = vcmask 254976   ;;  %vm255_vm2 = vcmask 1040384   ;;  %vm80_vm3 = vcmask 459776  }
  0x4c   :  { %381 = vmatprep.mubr.msk.f32.mxu0 %vm562_vm0, %v563_v1  ;;  %400 = vmatprep.mubr.msk.f32.mxu1 %vm562_vm0, %v563_v1  ;;  %v410_v5 = vpack.c.bf16 %v151_v3, %v150_v2  ;;  %v158_v7 = vld [vmem:[#allocation8] sm:$0xff]  ;;  %v159_v8 = vld [vmem:[#allocation8 + $0x8] sm:$0xff]  ;;  %v160_v12 = vld [vmem:[#allocation8 + $0x10] sm:$0xff]  ;;  %v413_v13 = vpack.c.bf16 %v153_v6, %v152_v4  ;;  %vm166_vm4 = vcmask 1041409   ;;  %vm168_vm5 = vcmask 1042434   ;;  %s565_s17 = smov [#allocation10]  }
  0x4d   :  { %v404_v9 = vpack.c.bf16 %v159_v8, %v158_v7  ;;  %v154_v10 = vld [vmem:[#allocation7 + $0x20] sm:$0xff]  ;;  %v155_v11 = vld [vmem:[#allocation7 + $0x28] sm:$0xff]  ;;  %v161_v14 = vld [vmem:[#allocation8 + $0x18] sm:$0xff]  ;;  %vm170_vm6 = vcmask 1043459   ;;  %vm564_vm7 = vmmov 1   ;;  %vm172_vm9 = vcmask 261120  }
  0x4e   :  { %411 = vmatpush3.bf16.msra.mxu1 %v410_v5  ;;  %v653_v15 = vld [vmem:[#allocation7 + $0x30] sm:$0xff]  ;;  %v655_v16 = vld [vmem:[#allocation7 + $0x38] sm:$0x1]  ;;  %v407_v17 = vpack.c.bf16 %v161_v14, %v160_v12  ;;  %v114_v19 = vld [vmem:[#allocation5 + $0x2] sm:$0x3]  ;;  %v416_v30 = vpack.c.bf16 %v155_v11, %v154_v10  ;;  %vm252_vm10 = vcmask 465920  }
  0x4f   :  { %412 = vmatprep.subr.bf16.mxu1 %v561_v0  ;;  %405 = vmatpush3.bf16.msra.mxu0 %v404_v9  ;;  %v113_v18 = vld [vmem:[#allocation5] sm:$0x3]  ;;  %v115_v20 = vld [vmem:[#allocation5 + $0x4] sm:$0x3]  ;;  %v116_v21 = vld [vmem:[#allocation5 + $0x6] sm:$0x3]  ;;  %v419_v31 = vpack.c.bf16 %v655_v16, %v653_v15 }
  0x50   :  { %406 = vmatprep.subr.bf16.mxu0 %v561_v0  ;;  %v118_v22 = vsel %vm117_vm1, %v113_v18, 0.0  ;;  %v125_v23 = vsel %vm117_vm1, %v114_v19, 0.0  ;;  %v132_v24 = vsel %vm117_vm1, %v115_v20, 0.0  ;;  %v139_v28 = vsel %vm117_vm1, %v116_v21, 0.0  ;;  %v76_v29 = vld [vmem:[#allocation2] sm:$0x3]  ;;  %vm420_vm8 = vmpackc.low %vm255_vm2, %vm564_vm7 }
  0x51   :  { %v119_v25 = vrot.slane %v118_v22, 4  ;;  %v126_v26 = vrot.slane %v125_v23, 4  ;;  %v133_v27 = vrot.slane %v132_v24, 4  ;;  %v140_v32 = vrot.slane %v139_v28, 4  ;;  %v77_v33 = vld [vmem:[#allocation2 + $0x2] sm:$0x3] }
  0x52   :  { %414 = vmatpush3.bf16.msra.mxu1 %v413_v13  ;;  %v78_v34 = vld [vmem:[#allocation2 + $0x4] sm:$0x3]  ;;  %v81_v35 = vsel %vm80_vm3, %v76_v29, 0.0  ;;  %v79_v39 = vld [vmem:[#allocation2 + $0x6] sm:$0x3]  ;;  %v88_v42 = vsel %vm80_vm3, %v77_v33, 0.0 }
  0x53   :  { %415 = vmatprep.subr.bf16.mxu1 %v561_v0  ;;  %408 = vmatpush3.bf16.msra.mxu0 %v407_v17  ;;  %v120_v36 = vadd.f32 %v119_v25, %v118_v22  ;;  %v127_v37 = vadd.f32 %v126_v26, %v125_v23  ;;  %v134_v38 = vadd.f32 %v133_v27, %v132_v24  ;;  %v82_v40 = vrot.slane %v81_v35, 4  ;;  %s344_s18 = sshll.u32 %s565_s17, 4  ;;  %s345_s18 = int_to_ptr.vmem [resolvable:$true] %s344_s18 }
  0x54   :  { %v141_v41 = vadd.f32 %v140_v32, %v139_v28  ;;  %v95_v43 = vsel %vm80_vm3, %v78_v34, 0.0  ;;  %v102_v44 = vsel %vm80_vm3, %v79_v39, 0.0  ;;  %v89_v50 = vrot.slane %v88_v42, 4  ;;  %s523_s19 = scalar_lea.vmem %s345_s18, 64  ;;  %p528_p5 = scmp.lt.s32.totalorder %s345_s18, %s345_s18 }
  0x55   :  { %v121_v45 = vrot.slane %v120_v36, 2  ;;  %v128_v46 = vrot.slane %v127_v37, 2  ;;  %v135_v47 = vrot.slane %v134_v38, 2  ;;  %v83_v48 = vadd.f32 %v82_v40, %v81_v35  ;;  %p524_p4 = scmp.ne.s32.totalorder %s345_s18, %s523_s19  ;;  %p529_p6 = scmp.lt.s32.totalorder %s523_s19, %s523_s19 }
  0x56   :  { %417 = vmatpush3.bf16.msra.mxu1 %v416_v30  ;;  %v142_v49 = vrot.slane %v141_v41, 2  ;;  %v96_v51 = vrot.slane %v95_v43, 4  ;;  %v103_v52 = vrot.slane %v102_v44, 4  ;;  %v90_v58 = vadd.f32 %v89_v50, %v88_v42 }
  0x57   :  { %418 = vmatprep.subr.bf16.mxu1 %v561_v0  ;;  %v122_v53 = vadd.f32 %v121_v45, %v120_v36  ;;  %v129_v54 = vadd.f32 %v128_v46, %v127_v37  ;;  %v136_v55 = vadd.f32 %v135_v47, %v134_v38  ;;  %v84_v56 = vrot.slane %v83_v48, 2  ;;  %v358_v37 = vld [vmem:[%s697_s4] ss:$0 sm:$0xff]  ;;  %p530_p7 = por %p529_p6, %p528_p5 }
  0x58   :  { %v143_v57 = vadd.f32 %v142_v49, %v141_v41  ;;  %v97_v59 = vadd.f32 %v96_v51, %v95_v43  ;;  %v104_v60 = vadd.f32 %v103_v52, %v102_v44  ;;  %v91_v3 = vrot.slane %v90_v58, 2 }
  0x59   :  { %v123_v61 = vrot.slane %v122_v53, 1  ;;  %v130_v62 = vrot.slane %v129_v54, 1  ;;  %v137_v63 = vrot.slane %v136_v55, 1  ;;  %v85_v1 = vadd.f32 %v84_v56, %v83_v48  ;;  %p531_p8 = pnand %p530_p7, %p524_p4 }
  0x5a   :  { %421 = vmatpush3.bf16.msk.msra.mxu1 %vm420_vm8, %v419_v31  ;;  %v144_v2 = vrot.slane %v143_v57, 1  ;;  %v98_v4 = vrot.slane %v97_v59, 2  ;;  %v105_v0 = vrot.slane %v104_v60, 2  ;;  %v92_v10 = vadd.f32 %v91_v3, %v90_v58 }
  0x5b   :  { %v124_v5 = vadd.f32 %v123_v61, %v122_v53  ;;  %v131_v6 = vadd.f32 %v130_v62, %v129_v54  ;;  %v138_v7 = vadd.f32 %v137_v63, %v136_v55  ;;  %v86_v8 = vrot.slane %v85_v1, 1 }
  0x5c   :  { %v145_v9 = vadd.f32 %v144_v2, %v143_v57  ;;  %v99_v11 = vadd.f32 %v98_v4, %v97_v59  ;;  %v106_v12 = vadd.f32 %v105_v0, %v104_v60  ;;  %v93_v18 = vrot.slane %v92_v10, 1 }
  0x5d   :  { %v146_v13 = vmul.f32 0.5, %v124_v5  ;;  %v147_v14 = vmul.f32 0.5, %v131_v6  ;;  %v148_v15 = vmul.f32 0.5, %v138_v7  ;;  %v87_v16 = vadd.f32 %v86_v8, %v85_v1 }
  0x5e   :  { %v149_v17 = vmul.f32 0.5, %v145_v9  ;;  %v100_v19 = vrot.slane %v99_v11, 1  ;;  %v107_v20 = vrot.slane %v106_v12, 1  ;;  %v94_v24 = vadd.f32 %v93_v18, %v92_v10 }
  0x5f   :  { %v167_v21 = vsel %vm166_vm4, %v147_v14, %v146_v13  ;;  %v109_v22 = vmul.f32 0.5, %v87_v16 }
  0x60   :  { %v169_v23 = vsel %vm168_vm5, %v148_v15, %v167_v21  ;;  %v101_v25 = vadd.f32 %v100_v19, %v99_v11  ;;  %v108_v26 = vadd.f32 %v107_v20, %v106_v12  ;;  %v110_v28 = vmul.f32 0.5, %v94_v24 }
  0x61   :  { %v171_v27 = vsel %vm170_vm6, %v149_v17, %v169_v23 }
  0x62   :  { %382 = vmatmul.mubr.msk.f32.vlgmr.msra.gmra.mrb[0].mxu0 %vm172_vm9, %v171_v27  ;;  %v111_v29 = vmul.f32 0.5, %v101_v25  ;;  %v112_v30 = vmul.f32 0.5, %v108_v26  ;;  %v249_v31 = vsel %vm166_vm4, %v110_v28, %v109_v22 }
  0x64   :  { %v250_v32 = vsel %vm168_vm5, %v111_v29, %v249_v31 }
  0x65   :  { %v251_v33 = vsel %vm170_vm6, %v112_v30, %v250_v32 }
  0x66   :  { %401 = vmatmul.mubr.msk.f32.vlgmr.msra.gmra.mrb[0].mxu1 %vm252_vm10, %v251_v33 }
 0x135   :  { %v241_v34 = vpop.f32.mrb[0].mxu0 }
 0x136   :  { %v383_v35 = vpop.f32.mrb[1].mxu0 }
 0x139   :  { %v325_v36 = vpop.f32.mrb[0].mxu1 }
 0x13a   :  { %v326_v38 = vadd.f32 %v325_v36, %v241_v34  ;;  %v402_v39 = vpop.f32.mrb[1].mxu1 }
 0x13c   :  { %v336_v40 = vadd.f32 %v358_v37, %v326_v38 }
 0x13e   :  { %337 = vst [vmem:[#allocation10] sm:$0xf] %v336_v40 }
 0x13f   :  { %534 = shalt.err (!%p531_p8)
}
 0x140   :  { %s535_s23 = scalar_lea.hbm %s698_s5, 64 }
 0x141   :  { %p536_p9 = scmp.ne.s32.totalorder %s698_s5, %s535_s23  ;;  %p539_p10 = scmp.lt.u32.totalorder %s535_s23, %s698_s5 }
 0x143   :  { %p541_p11 = pnand %p539_p10, %p536_p9 }
 0x145   :  { %544 = shalt.err (!%p541_p11)
}
 0x146   :  { %347 = dma.vmem_to_hbm [thread:$0]  %s345_s18, 64, %s698_s5, [#allocation4]  }
 0x147   :  { %551 = dma.done.wait [#allocation4], 64  }
 0x148   :  { %552 = vsyncadd [#allocation4], 4294967232 }
 0x149   :  { %351 = vsyncpa [#allocation3], 1 }
 0x14a   :  { %352 = vsyncpa [#allocation6], 1 }
 0x14b   :  { %353 = vsyncpa [#allocation9], 1 }
 0x14c   :  { %354 = vsyncpa [#allocation4], 1 }

</bundles_post_ra>
